<compile_context>
chip_gen: v7x
topology: tpu7x:2x2x1
jax: 0.10.0
libtpu: 0.0.40
codegen_flags: <defaults>
</compile_context>

<pallas_src>
import functools
import math

import jax
import jax.numpy as jnp
from jax.experimental import pallas as pl
from jax.experimental.pallas import tpu as pltpu


# ----------------------------------------------------------------------------
# Kernel: LayerNorm(x + y) over the last dim, one (tm, D) row-block per step.
# ----------------------------------------------------------------------------
def _add_ln_kernel(x_ref, y_ref, g_ref, b_ref, o_ref, *, eps):
    # All LayerNorm math in f32 (no bf16 VPU/EUP on v5e; better accuracy anyway).
    z = x_ref[...].astype(jnp.float32) + y_ref[...].astype(jnp.float32)
    # Single pass over z: mean and mean-of-squares, var = E[z^2] - mu^2 (>= 0).
    mu = jnp.mean(z, axis=-1, keepdims=True)
    mean_sq = jnp.mean(z * z, axis=-1, keepdims=True)
    var = jnp.maximum(mean_sq - mu * mu, 0.0)
    inv = jax.lax.rsqrt(var + eps)
    g = g_ref[...].astype(jnp.float32)
    b = b_ref[...].astype(jnp.float32)
    # Fused expression -> one f32 temporary besides z.
    o_ref[...] = ((z - mu) * inv * g + b).astype(o_ref.dtype)


# ----------------------------------------------------------------------------
# Row-tile sizing: byte-based, VMEM-budgeted, megacore-aware.
# ----------------------------------------------------------------------------
def _choose_row_tile(R, D, in_itemsize, *,
                     target_block_bytes=3 * 1024 * 1024,
                     vmem_budget_bytes=40 * 1024 * 1024):
    """Pick the per-step row-tile height: a multiple of 8, or the full extent."""
    if R <= 8:
        return R  # single full-extent block; legal regardless of divisibility
    # Per-row VMEM footprint: 2x double-buffered x, y, out blocks plus the two
    # full-tile f32 temporaries inside the kernel (z and the fused output expr).
    per_row_footprint = D * (6 * in_itemsize + 2 * 4)
    tm = min(target_block_bytes // (D * in_itemsize),
             vmem_budget_bytes // per_row_footprint)
    if R >= 16:
        # Guarantee >= 2 grid blocks so "parallel" megacore sharding engages (v7x).
        tm = min(tm, pl.cdiv(R, 2))
    tm = min(tm, R)
    tm = max(8, (tm // 8) * 8)
    return int(tm)


def residual_connection(x, sublayer_out, gamma, beta, *, eps=1e-6,
                        target_block_bytes=3 * 1024 * 1024):
    """ResidualConnection.forward: LayerNorm(x + sublayer_out) over the last dim.

    x, sublayer_out: (..., D);  gamma, beta: (D,)  (PyTorch nn.LayerNorm params).
    """
    assert x.shape == sublayer_out.shape
    orig_shape = x.shape
    D = orig_shape[-1]
    R = math.prod(orig_shape[:-1]) if len(orig_shape) > 1 else 1

    x2 = x.reshape(R, D)
    y2 = sublayer_out.reshape(R, D)
    g2 = gamma.reshape(1, D)
    b2 = beta.reshape(1, D)

    in_itemsize = jnp.dtype(x.dtype).itemsize
    tm = _choose_row_tile(R, D, in_itemsize, target_block_bytes=target_block_bytes)
    # Ragged last block: OOB reads only feed dead rows; OOB writes are dropped.
    grid = (pl.cdiv(R, tm),)

    row_spec = lambda i: (i, 0)
    param_spec = lambda i: (0, 0)

    # Only when a huge d_model forces the tile to the minimum: triple-buffer the
    # inputs to hide DMA issue latency (review suggestion; otherwise default 2).
    tiny_tile_forced = (target_block_bytes // (D * in_itemsize)) <= 16 and tm <= 16 and R > tm
    if tiny_tile_forced:
        x_spec = pl.BlockSpec((tm, D), row_spec, pipeline_mode=pl.Buffered(3))
        y_spec = pl.BlockSpec((tm, D), row_spec, pipeline_mode=pl.Buffered(3))
    else:
        x_spec = pl.BlockSpec((tm, D), row_spec)
        y_spec = pl.BlockSpec((tm, D), row_spec)

    cost = pl.CostEstimate(
        flops=10 * R * D,                                       # add + stats + normalize
        transcendentals=R,                                      # one rsqrt per row
        bytes_accessed=(3 * R * D + 2 * D) * in_itemsize,       # read x,y; write out; params
    )

    out = pl.pallas_call(
        functools.partial(_add_ln_kernel, eps=eps),
        out_shape=jax.ShapeDtypeStruct((R, D), x.dtype),
        grid=grid,
        in_specs=[
            x_spec,                                             # x rows
            y_spec,                                             # sublayer_out rows
            pl.BlockSpec((1, D), param_spec),                   # gamma (resident)
            pl.BlockSpec((1, D), param_spec),                   # beta  (resident)
        ],
        out_specs=pl.BlockSpec((tm, D), row_spec),              # lane-dense output
        compiler_params=pltpu.CompilerParams(
            dimension_semantics=("parallel",),                  # megacore sharding on v7x
            vmem_limit_bytes=48 * 1024 * 1024,                  # fits all generations
        ),
        cost_estimate=cost,
    )(x2, y2, g2, b2)

    return out.reshape(orig_shape)


# ----------------------------------------------------------------------------
# Pure-JAX reference for correctness checking.
# ----------------------------------------------------------------------------
def _reference(x, y, gamma, beta, eps=1e-6):
    z = (x + y).astype(jnp.float32)
    mu = jnp.mean(z, axis=-1, keepdims=True)
    var = jnp.mean(jnp.square(z - mu), axis=-1, keepdims=True)
    out = (z - mu) * jax.lax.rsqrt(var + eps) * gamma.astype(jnp.float32) + beta.astype(jnp.float32)
    return out.astype(x.dtype)


# ----------------------------------------------------------------------------
# Demo
# ----------------------------------------------------------------------------
if __name__ == "__main__":
    key = jax.random.PRNGKey(0)

    # 1) Small shapes consistent with the module: (batch, seq, d_model).
    batch, seq, d_model = 2, 8, 128
    k1, k2 = jax.random.split(key)
    x = jax.random.normal(k1, (batch, seq, d_model), jnp.float32)
    sub = jax.random.normal(k2, (batch, seq, d_model), jnp.float32)
    gamma = jnp.ones((d_model,), jnp.float32)   # nn.LayerNorm default init
    beta = jnp.zeros((d_model,), jnp.float32)

    fwd = jax.jit(functools.partial(residual_connection, eps=1e-6))
    out = jax.block_until_ready(fwd(x, sub, gamma, beta))
    assert out.shape == (batch, seq, d_model), out.shape
    assert jnp.all(jnp.isfinite(out))
    ref = _reference(x, sub, gamma, beta)
    assert jnp.allclose(out, ref, atol=1e-5, rtol=1e-5), float(jnp.max(jnp.abs(out - ref)))

    # 2) Larger case: exercises the ragged last block (R=1000, tm=496 -> 3 blocks),
    #    with no wrapper-side padding or slicing.
    k3, k4, k5, k6 = jax.random.split(k1, 4)
    x2 = jax.random.normal(k3, (4, 250, 256), jnp.float32)
    sub2 = jax.random.normal(k4, (4, 250, 256), jnp.float32)
    g2 = jax.random.normal(k5, (256,), jnp.float32)
    b2 = jax.random.normal(k6, (256,), jnp.float32)
    out2 = jax.block_until_ready(residual_connection(x2, sub2, g2, b2))
    ref2 = _reference(x2, sub2, g2, b2)
    assert jnp.allclose(out2, ref2, atol=1e-4, rtol=1e-4)

    # 3) bf16 inputs: f32 math inside the kernel, ragged last block again.
    k7, k8 = jax.random.split(k3)
    x3 = jax.random.normal(k7, (2, 100, 512), jnp.bfloat16)
    sub3 = jax.random.normal(k8, (2, 100, 512), jnp.bfloat16)
    g3 = jnp.ones((512,), jnp.float32)
    b3 = jnp.zeros((512,), jnp.float32)
    out3 = jax.block_until_ready(residual_connection(x3, sub3, g3, b3))
    ref3 = _reference(x3, sub3, g3, b3)
    assert jnp.allclose(out3.astype(jnp.float32), ref3.astype(jnp.float32),
                        atol=3e-2, rtol=3e-2)

    # TODO(synk): no dropout in this module; nothing else to translate.
    print("KERNEL_OK")
</pallas_src>

<mosaic_0001>
module attributes {stable_mosaic.version = 11 : i64} {
  func.func @_add_ln_kernel(%arg0: i32, %arg1: memref<8x128xf32, #tpu.memory_space<vmem>>, %arg2: memref<8x128xf32, #tpu.memory_space<vmem>>, %arg3: memref<1x128xf32, #tpu.memory_space<vmem>>, %arg4: memref<1x128xf32, #tpu.memory_space<vmem>>, %arg5: memref<8x128xf32, #tpu.memory_space<vmem>>) attributes {dimension_semantics = [#tpu.dimension_semantics<parallel>], iteration_bounds = array<i64: 2>, scalar_prefetch = 0 : i64, scratch_operands = 0 : i64, tpu.core_type = #tpu.core_type<tc>, window_params = [{transform_indices = @transform_0, window_bounds = array<i64: 8, 128>}, {transform_indices = @transform_1, window_bounds = array<i64: 8, 128>}, {pipeline_mode = #tpu.pipeline_mode<synchronous>, transform_indices = @transform_2, window_bounds = array<i64: 1, 128>}, {pipeline_mode = #tpu.pipeline_mode<synchronous>, transform_indices = @transform_3, window_bounds = array<i64: 1, 128>}, {transform_indices = @transform_4, window_bounds = array<i64: 8, 128>}]} {
    %c0 = arith.constant 0 : index
    %c0_0 = arith.constant 0 : index
    %0 = vector.load %arg1[%c0, %c0_0] : memref<8x128xf32, #tpu.memory_space<vmem>>, vector<8x128xf32>
    %c0_1 = arith.constant 0 : index
    %c0_2 = arith.constant 0 : index
    %1 = vector.load %arg2[%c0_1, %c0_2] : memref<8x128xf32, #tpu.memory_space<vmem>>, vector<8x128xf32>
    %2 = arith.addf %0, %1 : vector<8x128xf32>
    %cst = arith.constant dense<0.000000e+00> : vector<8xf32>
    %3 = vector.multi_reduction <add>, %2, %cst [1] : vector<8x128xf32> to vector<8xf32>
    %4 = vector.shape_cast %3 : vector<8xf32> to vector<8x1xf32>
    %cst_3 = arith.constant 1.280000e+02 : f32
    %5 = vector.broadcast %cst_3 : f32 to vector<8x1xf32>
    %6 = arith.divf %4, %5 : vector<8x1xf32>
    %7 = arith.mulf %2, %2 : vector<8x128xf32>
    %cst_4 = arith.constant dense<0.000000e+00> : vector<8xf32>
    %8 = vector.multi_reduction <add>, %7, %cst_4 [1] : vector<8x128xf32> to vector<8xf32>
    %9 = vector.shape_cast %8 : vector<8xf32> to vector<8x1xf32>
    %cst_5 = arith.constant 1.280000e+02 : f32
    %10 = vector.broadcast %cst_5 : f32 to vector<8x1xf32>
    %11 = arith.divf %9, %10 : vector<8x1xf32>
    %12 = arith.mulf %6, %6 : vector<8x1xf32>
    %13 = arith.subf %11, %12 : vector<8x1xf32>
    %cst_6 = arith.constant 0.000000e+00 : f32
    %14 = vector.broadcast %cst_6 : f32 to vector<8x1xf32>
    %15 = arith.maximumf %13, %14 : vector<8x1xf32>
    %cst_7 = arith.constant 9.99999997E-7 : f32
    %16 = vector.broadcast %cst_7 : f32 to vector<8x1xf32>
    %17 = arith.addf %15, %16 : vector<8x1xf32>
    %18 = math.rsqrt %17 : vector<8x1xf32>
    %c0_8 = arith.constant 0 : index
    %c0_9 = arith.constant 0 : index
    %19 = vector.load %arg3[%c0_8, %c0_9] : memref<1x128xf32, #tpu.memory_space<vmem>>, vector<1x128xf32>
    %c0_10 = arith.constant 0 : index
    %c0_11 = arith.constant 0 : index
    %20 = vector.load %arg4[%c0_10, %c0_11] : memref<1x128xf32, #tpu.memory_space<vmem>>, vector<1x128xf32>
    %21 = vector.broadcast %6 : vector<8x1xf32> to vector<8x128xf32>
    %22 = arith.subf %2, %21 : vector<8x128xf32>
    %23 = vector.broadcast %18 : vector<8x1xf32> to vector<8x128xf32>
    %24 = arith.mulf %22, %23 : vector<8x128xf32>
    %25 = vector.broadcast %19 : vector<1x128xf32> to vector<8x128xf32>
    %26 = arith.mulf %24, %25 : vector<8x128xf32>
    %27 = vector.broadcast %20 : vector<1x128xf32> to vector<8x128xf32>
    %28 = arith.addf %26, %27 : vector<8x128xf32>
    %c0_12 = arith.constant 0 : index
    %c0_13 = arith.constant 0 : index
    %29 = vector.load %arg5[%c0_12, %c0_13] : memref<8x128xf32, #tpu.memory_space<vmem>>, vector<8x128xf32>
    tpu.vector_store %arg5[%c0_12, %c0_13], %28 {strides = array<i32>} : memref<8x128xf32, #tpu.memory_space<vmem>>, vector<8x128xf32>,
    return
  }
  func.func @transform_0(%arg0: i32) -> (i32, i32) {
    %c0_i32 = arith.constant 0 : i32
    %c0_i32_0 = arith.constant 0 : i32
    return %arg0, %c0_i32 : i32, i32
  }
  func.func @transform_1(%arg0: i32) -> (i32, i32) {
    %c0_i32 = arith.constant 0 : i32
    %c0_i32_0 = arith.constant 0 : i32
    return %arg0, %c0_i32 : i32, i32
  }
  func.func @transform_2(%arg0: i32) -> (i32, i32) {
    %c0_i32 = arith.constant 0 : i32
    %c0_i32_0 = arith.constant 0 : i32
    %c0_i32_1 = arith.constant 0 : i32
    return %c0_i32, %c0_i32_0 : i32, i32
  }
  func.func @transform_3(%arg0: i32) -> (i32, i32) {
    %c0_i32 = arith.constant 0 : i32
    %c0_i32_0 = arith.constant 0 : i32
    %c0_i32_1 = arith.constant 0 : i32
    return %c0_i32, %c0_i32_0 : i32, i32
  }
  func.func @transform_4(%arg0: i32) -> (i32, i32) {
    %c0_i32 = arith.constant 0 : i32
    %c0_i32_0 = arith.constant 0 : i32
    return %arg0, %c0_i32 : i32, i32
  }
}

</mosaic_0001>

<bundles_post_ra>
// kernel: residual_connection.1
= control target key start
LH: loop header
LB: loop body
LE: loop exit
PB: predicated region body
PF: predicated region fallthrough
CT: control target
= control target key end

     0   :  { %9 = vsyncpa [#allocation3], 0  ;;  %s725_s0 = inlined_call_operand.hbm [shape: f32[16,128], index: 0, kind: input, shape index: {}]   ;;  %s726_s1 = inlined_call_operand.vmem [shape: f32[16,128], index: 1, kind: input, shape index: {}]   ;;  %s727_s2 = inlined_call_operand.vmem [shape: f32[1,128], index: 2, kind: input, shape index: {}]   ;;  %s728_s3 = inlined_call_operand.vmem [shape: f32[1,128], index: 3, kind: input, shape index: {}]   ;;  %s729_s4 = inlined_call_operand.hbm [shape: f32[16,128], index: 4, kind: output, shape index: {}]  }
   0x1   :  { %11 = vsyncpa [#allocation3 + $0x1], 0 }
   0x2   :  { %12 = vsyncpa [#allocation4], 0 }
   0x3   :  { %14 = vsyncpa [#allocation4 + $0x1], 0  ;;  %s549_s15 = smov 0   ;;  %s551_s16 = smov 0  }
   0x4   :  { %s553_s17 = smov 0   ;;  %s555_s18 = smov 0  }
   0x5 LB: > { %s570_s19 = sadd.s32 4294967295, %s520_s18   ;;  %s361_s20 = sadd.s32 4294967294, %s520_s18   ;;  %s520_s18 = sphi %s555_s18, %s744_s18   ;;  %s516_s17 = sphi %s553_s17, %s743_s17   ;;  %s512_s16 = sphi %s551_s16, %s742_s16   ;;  %s508_s15 = sphi %s549_s15, %s741_s15  }
   0x6   : > { %s574_s21 = sadd.s32 1, %s520_s18   ;;  %s27_s22 = sadd.s32 1, %s516_s17 }
   0x7   : > { %s24_s23 = ssub.s32 %s520_s18, %s574_s21  ;;  %p34_p0 = scmp.ne.s32.totalorder %s516_s17, %s512_s16 }
   0x8   : > { %p25_p1 = scmp.eq.s32.totalorder %s24_s23, 0  ;;  %p35_p2 = scmp.eq.s32.totalorder %s520_s18, 0 }
   0x9   : > { %p40_p3 = scmp.ne.s32.totalorder %s512_s16, %s508_s15  ;;  %p41_p4 = scmp.eq.s32.totalorder %s570_s19, 0 }
   0xa   : > { %s586_s24 = scalar_select %p25_p1, %s516_s17, %s27_s22  }
   0xb   : > { %p588_p5 = por %p35_p2, %p34_p0  ;;  %p592_p6 = por %p41_p4, %p40_p3 }
   0xc   : > { %p132_p7 = scmp.eq.s32.totalorder %s570_s19, 1  ;;  %p138_p8 = scmp.eq.s32.totalorder %s361_s20, 1 }
   0xd   : > { %p388_p10 = scmp.lt.s32.totalorder %s520_s18, 2  ;;  %s164_s29 = sand.u32 1, %s516_s17  }
   0xe   : > { %p599_p11 = por %p132_p7, %p34_p0  ;;  %p603_p12 = por %p138_p8, %p40_p3 }
   0xf   : > { %s365_s30 = sshll.u32 %s520_s18, 7  ;;  %s364_s5 = sshll.u32 %s164_s29, 3 }
  0x10   : > { %s733_s27 = scalar_select %p599_p11, 1, 0 }
  0x11   : > { %s734_s28 = scalar_select %p603_p12, 1, 0 }
  0x12   : > { %s612_s8 = scalar_lea.hbm %s725_s0, %s365_s30  ;;  %s168_s9 = scalar_lea.vmem [#allocation2], %s364_s5 }
  0x13   : > { %s175_s10 = sshll.u32 %s168_s9, 4  ;;  %p616_p13 = pnand %p388_p10, %p588_p5  ;;  %s620_s10 = int_to_ptr.vmem [resolvable:$true] %s175_s10 }
  0x14   : > { %s165_s12 = scalar_lea.sflag [#allocation3], %s164_s29  ;;  %s424_s13 = scalar_lea.hbm %s612_s8, 128 }
  0x15   : > { %p425_p2 = scmp.ne.s32.totalorder %s612_s8, %s424_s13  ;;  %p426_p3 = pneg %p616_p13 }
  0x16   : > { %s429_s22 = scalar_lea.hbm %s725_s0, 256  ;;  %p430_p5 = scmp.lt.u32.totalorder %s612_s8, %s725_s0 }
  0x17   : > { %p427_p4 = pnand %p426_p3, %p425_p2  ;;  %p431_p8 = scmp.lt.u32.totalorder %s429_s22, %s424_s13 }
  0x18   : > { %p433_p9 = scmp.lt.u32.totalorder %s424_s13, %s612_s8 }
  0x19   : > { %p428_p7 = pneg %p427_p4  ;;  %p432_p10 = por %p431_p8, %p430_p5 }
  0x1b   : > { %p434_p0 = por %p433_p9, %p432_p10 }
  0x1d   : > { %p435_p1 = pnand %p434_p0, %p428_p7 }
  0x1f   : > { %438 = shalt.err (!%p435_p1)
}
  0x20   : > { %s439_s29 = scalar_lea.vmem %s620_s10, 128  ;;  %s522_s30 = smov [#allocation2]  }
  0x21   : > { %p440_p2 = scmp.ne.s32.totalorder %s620_s10, %s439_s29  ;;  %s444_s5 = sshll.u32 %s522_s30, 4  ;;  %s445_s5 = int_to_ptr.vmem [resolvable:$false] %s444_s5 }
  0x22   : > { %s446_s6 = scalar_lea.vmem %s445_s5, 256  ;;  %p447_p11 = scmp.lt.s32.totalorder %s620_s10, %s445_s5 }
  0x23   : > { %p442_p4 = pnand %p440_p2, %p426_p3  ;;  %p448_p5 = scmp.lt.s32.totalorder %s446_s6, %s439_s29 }
  0x25   : > { %p443_p12 = pneg %p442_p4  ;;  %p449_p8 = por %p448_p5, %p447_p11 }
  0x27   : > { %p450_p9 = pnand %p449_p8, %p443_p12 }
  0x29   : > { %453 = shalt.err (!%p450_p9)
}
  0x2a   : > { %383 = dma.hbm_to_vmem [thread:$0]  (!%p616_p13), %s612_s8, 128, %s620_s10, %s165_s12  }
  0x2b   : > { %p736_p0 = scmp.lt.s32.totalorder %s520_s18, 3  ;;  %p737_p1 = scmp.ge.s32.totalorder %s520_s18, 1 }
  0x2d   : > { %p188_p3 = pnand %p737_p1, %p736_p0 }
  0x2e   : > { %s654_s7 = sand.u32 (!%p188_p3), 1, %s512_s16  }
  0x2f   : > { %191 = sbr.rel (%p188_p3) target bundleno = 249 (0xf9), region = 36  ;;  %s367_s9 = sshll.u32 (!%p188_p3), %s654_s7, 3 }
  0x30   : > { %s194_s13 = scalar_lea.sflag (!%p188_p3), [#allocation3], %s654_s7  ;;  %s197_s11 = scalar_lea.vmem (!%p188_p3), [#allocation2], %s367_s9 }
  0x36   : > { %499 = dma.done.wait (%p592_p6), %s194_s13, 128  }
  0x37   : > { %501 = vsyncadd (%p592_p6), %s194_s13, 4294967168  ;;  %p226_p11 = scmp.lt.s32.totalorder %s570_s19, 1  ;;  %v230_v0 = vld [vmem:[%s197_s11] sm:$0xff]  ;;  %s373_s29 = sshll.u32 %s570_s19, 7 }
  0x38   : > { %v370_v14 = vld [vmem:[%s727_s2] ss:$0 sm:$0xff]  ;;  %s225_s30 = scalar_lea.vmem [#allocation5], %s367_s9  ;;  %s681_s11 = scalar_lea.hbm %s729_s4, %s373_s29 }
  0x39   : > { %s227_s8 = scalar_select %p226_p11, %s570_s19, 1  ;;  %v371_v16 = vld [vmem:[%s728_s3] ss:$0 sm:$0xff] }
  0x3a   : > { %s279_s5 = sshll.u32 %s225_s30, 4  ;;  %p738_p12 = scmp.ne.s32.totalorder %s733_s27, 0  ;;  %s683_s5 = int_to_ptr.vmem [resolvable:$true] %s279_s5 }
  0x3b   : > { %s369_s10 = sshll.u32 %s227_s8, 3  ;;  %s266_s8 = scalar_lea.sflag [#allocation4], %s654_s7 }
  0x3c   : > { %s229_s20 = scalar_lea.vmem %s726_s1, %s369_s10  ;;  %s454_s10 = scalar_lea.vmem %s683_s5, 128 }
  0x3d   : > { %v231_v1 = vld [vmem:[%s229_s20] sm:$0xff]  ;;  %p455_p6 = scmp.ne.s32.totalorder %s683_s5, %s454_s10  ;;  %s523_s19 = smov [#allocation5]  }
  0x3e   : > { %v232_v2 = vadd.f32 %v231_v1, %v230_v0  ;;  %s458_s9 = sshll.u32 %s523_s19, 4  ;;  %s459_s9 = int_to_ptr.vmem [resolvable:$false] %s458_s9 }
  0x3f   : > { %p456_p13 = pnand %p455_p6, %p738_p12  ;;  %s460_s12 = scalar_lea.vmem %s459_s9, 256 }
  0x40   : > { %233 = vadd.xlane.f32.xlu0 %v232_v2  ;;  %v237_v3 = vmul.f32 %v232_v2, %v232_v2  ;;  %p461_p10 = scmp.lt.s32.totalorder %s683_s5, %s459_s9  ;;  %p462_p2 = scmp.lt.s32.totalorder %s460_s12, %s454_s10 }
  0x41   : > { %p457_p7 = pneg %p456_p13 }
  0x42   : > { %p463_p4 = por %p462_p2, %p461_p10 }
  0x44   : > { %238 = vadd.xlane.f32.xlu0 %v237_v3  ;;  %p464_p5 = pnand %p463_p4, %p457_p7 }
  0xcd   : > { %v234_v4 = vpop.xlane.xlu0 %233 }
  0xce   : > { %v236_v5 = vmul.f32 0.0078125, %v234_v4 }
  0xd0   : > { %v241_v7 = vmul.f32 %v236_v5, %v236_v5  ;;  %v248_v12 = vsub.f32 %v232_v2, %v236_v5 }
  0xd1   : > { %v239_v6 = vpop.xlane.xlu0 %238 }
  0xd2   : > { %v240_v8 = vmul.f32 0.0078125, %v239_v6 }
  0xd4   : > { %v242_v9 = vsub.f32 %v240_v8, %v241_v7 }
  0xd6   : > { %v243_v10 = vmax.f32 %v242_v9, 0.0 }
  0xd8   : > { %v244_v11 = vadd.f32 1e-06, %v243_v10 }
  0xda   : > { %422 = vrsqrt.f32 %v244_v11 }
  0xe4   : > { %v423_v13 = vpop.eup %422 }
  0xe5   : > { %v249_v15 = vmul.f32 %v423_v13, %v248_v12 }
  0xe7   : > { %v256_v17 = vmul.f32 %v370_v14, %v249_v15 }
  0xe9   : > { %v263_v18 = vadd.f32 %v371_v16, %v256_v17 }
  0xeb   : > { %264 = vst [vmem:[%s225_s30] sm:$0xff] %v263_v18 }
  0xec   : > { %467 = shalt.err (!%p464_p5)
}
  0xed   : > { %s468_s7 = scalar_lea.hbm %s681_s11, 128  ;;  %s472_s26 = scalar_lea.hbm %s729_s4, 256 }
  0xee   : > { %p469_p8 = scmp.ne.s32.totalorder %s681_s11, %s468_s7  ;;  %p473_p1 = scmp.lt.u32.totalorder %s681_s11, %s729_s4 }
  0xef   : > { %p474_p3 = scmp.lt.u32.totalorder %s472_s26, %s468_s7  ;;  %p476_p6 = scmp.lt.u32.totalorder %s468_s7, %s681_s11 }
  0xf0   : > { %p470_p9 = pnand %p469_p8, %p738_p12 }
  0xf1   : > { %p475_p11 = por %p474_p3, %p473_p1 }
  0xf2   : > { %p471_p0 = pneg %p470_p9 }
  0xf3   : > { %p477_p13 = por %p476_p6, %p475_p11 }
  0xf5   : > { %p478_p7 = pnand %p477_p13, %p471_p0 }
  0xf7   : > { %481 = shalt.err (!%p478_p7)
}
  0xf8   : > { %378 = dma.vmem_to_hbm [thread:$0]  (%p738_p12), %s683_s5, 128, %s681_s11, %s266_s8  }
  0xf9 PF: > { %s291_s25 = sand.u32 1, %s508_s15   ;;  %p739_p10 = scmp.ne.s32.totalorder %s734_s28, 0 }
  0xfa   : > { %p740_p2 = scmp.ge.s32.totalorder %s520_s18, 2  ;;  %s292_s29 = scalar_lea.sflag [#allocation4], %s291_s25 }
  0xfc   : > { %p385_p4 = pnand %p740_p2, %p739_p10 }
  0xfe   : > { %503 = dma.done.wait (!%p385_p4), %s292_s29, 128  }
  0xff   : > { %505 = vsyncadd (!%p385_p4), %s292_s29, 4294967168  ;;  %p17_p5 = scmp.ge.s32.totalorder %s574_s21, 4   ;;  %s741_s15 = smov %s512_s16 }
 0x100   : > { %s742_s16 = smov %s516_s17  ;;  %s743_s17 = smov %s586_s24 }
 0x101   : > { %s744_s18 = smov %s574_s21  ;;  %19 = sbr.rel (!%p17_p5) target bundleno = 5 (0x5), region = 84 }
 0x108   :  { %297 = vsyncpa [#allocation3], 1 }
 0x109   :  { %299 = vsyncpa [#allocation3 + $0x1], 1 }
 0x10a   :  { %300 = vsyncpa [#allocation4], 1 }
 0x10b   :  { %302 = vsyncpa [#allocation4 + $0x1], 1 }

</bundles_post_ra>
